<compile_context>
chip_gen: v5e
topology: v5e:2x2
jax: 0.10.0
libtpu: 0.0.40
codegen_flags: <defaults>
</compile_context>

<pallas_src>
import jax
import jax.numpy as jnp
from jax.experimental import pallas as pl
from jax.experimental.pallas import tpu as pltpu

# Deterministic "config" (cfg.LOSSES.ALPHA / BETA / A) -- canonical SCE values.
ALPHA = 0.1
BETA = 1.0
A = -4.0

_MAX_TILE_N = 8192


def _round_up(v, m):
    return -(-v // m) * m


def _sublane_multiple(itemsize):
    # Sublane row packing: f32 -> 8, bf16/f16 -> 16, int8/fp8 -> 32.
    if itemsize >= 4:
        return 8
    if itemsize == 2:
        return 16
    return 32


def _auto_tile_n(n, c, x_itemsize):
    """Largest dtype-aligned batch tile fitting the VMEM budget, plus the
    scoped-VMEM limit to request from the compiler."""
    try:
        vmem_bytes = pltpu.get_tpu_info().vmem_capacity_bytes
    except Exception:  # pragma: no cover - conservative fallback (v7x-sized)
        vmem_bytes = 64 * 1024 * 1024

    sub = _sublane_multiple(x_itemsize)
    c_pad = _round_up(c, 128)
    # Per-row VMEM footprint:
    #   logits input tile, double-buffered            : 2 * c_pad * itemsize
    #   (tile_n, 1) int32 labels (lane-padded), x2    : 2 * 512 B
    #   f32 working set (cast / exp / selects)        : ~4 * c_pad * 4
    per_row = 2 * c_pad * x_itemsize + 1024 + 4 * c_pad * 4

    vmem_limit = int(min(vmem_bytes // 2, 96 * 1024 * 1024))
    budget = vmem_limit - (4 << 20)  # slack for output buffers / misc

    tile = budget // max(per_row, 1)
    tile = max(sub, (int(tile) // sub) * sub)
    tile = min(tile, _MAX_TILE_N)
    tile = min(tile, _round_up(n, sub))
    return tile, vmem_limit


def _make_kernel(tile_n, n_valid):
    needs_mask = (n_valid % tile_n) != 0

    def kernel(x_ref, y_ref, cls_ref, ce_out_ref, comp_out_ref):
        x = x_ref[...].astype(jnp.float32)                 # [tile_n, C]
        y = y_ref[...]                                     # [tile_n, 1] int32
        tn, c = x.shape

        # One-hot mask for the true class (resident class-id row, no per-step iota).
        cls_row = jnp.broadcast_to(cls_ref[...], (tn, c))  # [tile_n, C] int32
        onehot = cls_row == y                              # bool [tile_n, C]

        m = jnp.max(x, axis=1, keepdims=True)              # [tile_n, 1]
        e = jnp.exp(x - m)                                 # single EUP pass
        s = jnp.sum(e, axis=1, keepdims=True)              # full prob mass (unnorm.)
        s_off = jnp.sum(jnp.where(onehot, 0.0, e), axis=1, keepdims=True)
        x_true = jnp.sum(jnp.where(onehot, x, 0.0), axis=1, keepdims=True)

        ce_row = jnp.log(s) - (x_true - m)                 # per-row NLL
        comp_row = s_off / s                               # off-class prob mass

        if needs_mask:
            # Ragged last block: out-of-bounds rows hold undefined data.
            rows = pl.program_id(0) * tile_n + jax.lax.broadcasted_iota(
                jnp.int32, (tn, 1), 0)
            valid = rows < n_valid
            ce_row = jnp.where(valid, ce_row, 0.0)
            comp_row = jnp.where(valid, comp_row, 0.0)

        ce_s = jnp.sum(ce_row, axis=0, keepdims=True)      # (1, 1) tile partial
        comp_s = jnp.sum(comp_row, axis=0, keepdims=True)  # (1, 1) tile partial

        # Lane-dense, unmasked stores of the per-tile partials.
        ce_out_ref[...] = jnp.broadcast_to(ce_s, (8, 128)).reshape(1, 8, 128)
        comp_out_ref[...] = jnp.broadcast_to(comp_s, (8, 128)).reshape(1, 8, 128)

    return kernel


def symm_entropy_loss(x, y, *, tile_n=None, alpha=ALPHA, beta=BETA, a=A):
    """Pallas equivalent of SymmEntropyLoss.forward.

    Returns (loss, ('03. symmetric cross entropy loss: ', loss)) with the loss
    kept on device (no host sync).
    """
    n, c = x.shape
    itemsize = jnp.dtype(x.dtype).itemsize
    sub = _sublane_multiple(itemsize)

    auto_tile, vmem_limit = _auto_tile_n(n, c, itemsize)
    if tile_n is None:
        tile_n = auto_tile
    else:
        tile_n = max(sub, (int(tile_n) // sub) * sub)
        tile_n = min(tile_n, _round_up(n, sub))

    num_tiles = pl.cdiv(n, tile_n)
    y2 = y.astype(jnp.int32).reshape(n, 1)
    cls_ids = jax.lax.broadcasted_iota(jnp.int32, (1, c), 1)

    kernel = _make_kernel(tile_n, n)

    ce_parts, comp_parts = pl.pallas_call(
        kernel,
        out_shape=(
            jax.ShapeDtypeStruct((num_tiles, 8, 128), jnp.float32),
            jax.ShapeDtypeStruct((num_tiles, 8, 128), jnp.float32),
        ),
        grid_spec=pltpu.PrefetchScalarGridSpec(
            num_scalar_prefetch=0,
            grid=(num_tiles,),
            in_specs=[
                pl.BlockSpec((tile_n, c), lambda i: (i, 0)),   # logits tile
                pl.BlockSpec((tile_n, 1), lambda i: (i, 0)),   # labels tile
                pl.BlockSpec((1, c), lambda i: (0, 0)),        # resident class ids
            ],
            out_specs=(
                pl.BlockSpec((1, 8, 128), lambda i: (i, 0, 0)),
                pl.BlockSpec((1, 8, 128), lambda i: (i, 0, 0)),
            ),
        ),
        compiler_params=pltpu.CompilerParams(
            dimension_semantics=("parallel",),   # independent per-tile partials
            vmem_limit_bytes=vmem_limit,
        ),
    )(x, y2, cls_ids)

    # Tiny final reduction + scalar combine in XLA.
    inv_n = 1.0 / float(n)
    ce_mean = jnp.sum(ce_parts[:, 0, 0]) * inv_n
    comp_mean = jnp.sum(comp_parts[:, 0, 0]) * inv_n
    # loss_rce = -mean(A * (1 - p_true)) = -A * comp_mean
    loss = alpha * ce_mean + beta * (-a) * comp_mean
    return loss, ("03. symmetric cross entropy loss: ", loss)


def _reference(x, y, alpha=ALPHA, beta=BETA, a=A):
    # Pure-JAX reference for verification.
    x = x.astype(jnp.float32)
    logp = jax.nn.log_softmax(x, axis=1)
    n = x.shape[0]
    ce = -jnp.mean(logp[jnp.arange(n), y])
    p = jax.nn.softmax(x, axis=1)
    onehot = jax.nn.one_hot(y, x.shape[1], dtype=x.dtype)
    p = p * (1.0 - onehot) * a
    rce = -jnp.mean(jnp.sum(p, axis=1))
    return alpha * ce + beta * rce


if __name__ == "__main__":
    key = jax.random.PRNGKey(0)
    kx, ky = jax.random.split(key)
    N, C = 80, 128  # small: 80 rows, 128 classes (lane-dense class axis)
    x = jax.random.normal(kx, (N, C), dtype=jnp.float32)
    y = jax.random.randint(ky, (N,), 0, C, dtype=jnp.int32)

    ref = _reference(x, y)

    # 1) forced small tile -> multi-step grid + ragged-last-tile masking path
    loss_a, _log = symm_entropy_loss(x, y, tile_n=32)
    loss_a = jax.block_until_ready(loss_a)
    assert jnp.allclose(loss_a, ref, atol=1e-5, rtol=1e-5), (loss_a, ref)

    # 2) auto (VMEM-capacity-derived) tile -> single-step grid path
    loss_b, _log_b = symm_entropy_loss(x, y)
    loss_b = jax.block_until_ready(loss_b)
    assert jnp.allclose(loss_b, ref, atol=1e-5, rtol=1e-5), (loss_b, ref)

    # 3) bf16 fast path (16-row sublane packing, cast to f32 inside the kernel)
    x_bf = x.astype(jnp.bfloat16)
    ref_bf = _reference(x_bf, y)
    loss_c, _log_c = symm_entropy_loss(x_bf, y, tile_n=48)
    loss_c = jax.block_until_ready(loss_c)
    assert jnp.allclose(loss_c, ref_bf, atol=1e-4, rtol=1e-4), (loss_c, ref_bf)

    print("KERNEL_OK")
</pallas_src>

<mosaic_0001>
module attributes {stable_mosaic.version = 11 : i64} {
  func.func @kernel(%arg0: i32, %arg1: memref<32x128xf32, #tpu.memory_space<vmem>>, %arg2: memref<32x1xi32, #tpu.memory_space<vmem>>, %arg3: memref<1x128xi32, #tpu.memory_space<vmem>>, %arg4: memref<1x8x128xf32, #tpu.memory_space<vmem>>, %arg5: memref<1x8x128xf32, #tpu.memory_space<vmem>>) attributes {dimension_semantics = [#tpu.dimension_semantics<parallel>], iteration_bounds = array<i64: 3>, scalar_prefetch = 0 : i64, scratch_operands = 0 : i64, tpu.core_type = #tpu.core_type<tc>, window_params = [{transform_indices = @transform_0, window_bounds = array<i64: 32, 128>}, {transform_indices = @transform_1, window_bounds = array<i64: 32, 1>}, {pipeline_mode = #tpu.pipeline_mode<synchronous>, transform_indices = @transform_2, window_bounds = array<i64: 1, 128>}, {transform_indices = @transform_3, window_bounds = array<i64: 1, 8, 128>}, {transform_indices = @transform_4, window_bounds = array<i64: 1, 8, 128>}]} {
    %c0 = arith.constant 0 : index
    %c0_0 = arith.constant 0 : index
    %0 = vector.load %arg1[%c0, %c0_0] : memref<32x128xf32, #tpu.memory_space<vmem>>, vector<32x128xf32>
    %c0_1 = arith.constant 0 : index
    %c0_2 = arith.constant 0 : index
    %1 = vector.load %arg2[%c0_1, %c0_2] : memref<32x1xi32, #tpu.memory_space<vmem>>, vector<32x1xi32>
    %c0_3 = arith.constant 0 : index
    %c0_4 = arith.constant 0 : index
    %2 = vector.load %arg3[%c0_3, %c0_4] : memref<1x128xi32, #tpu.memory_space<vmem>>, vector<1x128xi32>
    %3 = vector.shape_cast %2 : vector<1x128xi32> to vector<1x128xi32>
    %4 = vector.broadcast %3 : vector<1x128xi32> to vector<32x128xi32>
    %5 = vector.broadcast %1 : vector<32x1xi32> to vector<32x128xi32>
    %6 = arith.cmpi eq, %4, %5 : vector<32x128xi32>
    %cst = arith.constant dense<0xFF800000> : vector<32xf32>
    %7 = vector.multi_reduction <maximumf>, %0, %cst [1] : vector<32x128xf32> to vector<32xf32>
    %8 = vector.shape_cast %7 : vector<32xf32> to vector<32x1xf32>
    %9 = vector.broadcast %8 : vector<32x1xf32> to vector<32x128xf32>
    %10 = arith.subf %0, %9 : vector<32x128xf32>
    %11 = math.exp %10 : vector<32x128xf32>
    %cst_5 = arith.constant dense<0.000000e+00> : vector<32xf32>
    %12 = vector.multi_reduction <add>, %11, %cst_5 [1] : vector<32x128xf32> to vector<32xf32>
    %13 = vector.shape_cast %12 : vector<32xf32> to vector<32x1xf32>
    %cst_6 = arith.constant 0.000000e+00 : f32
    %14 = vector.broadcast %cst_6 : f32 to vector<32x128xf32>
    %15 = arith.select %6, %14, %11 : vector<32x128xi1>, vector<32x128xf32>
    %cst_7 = arith.constant dense<0.000000e+00> : vector<32xf32>
    %16 = vector.multi_reduction <add>, %15, %cst_7 [1] : vector<32x128xf32> to vector<32xf32>
    %17 = vector.shape_cast %16 : vector<32xf32> to vector<32x1xf32>
    %cst_8 = arith.constant 0.000000e+00 : f32
    %18 = vector.broadcast %cst_8 : f32 to vector<32x128xf32>
    %19 = arith.select %6, %0, %18 : vector<32x128xi1>, vector<32x128xf32>
    %cst_9 = arith.constant dense<0.000000e+00> : vector<32xf32>
    %20 = vector.multi_reduction <add>, %19, %cst_9 [1] : vector<32x128xf32> to vector<32xf32>
    %21 = vector.shape_cast %20 : vector<32xf32> to vector<32x1xf32>
    %22 = math.log %13 : vector<32x1xf32>
    %23 = arith.subf %21, %8 : vector<32x1xf32>
    %24 = arith.subf %22, %23 : vector<32x1xf32>
    %25 = arith.divf %17, %13 : vector<32x1xf32>
    %c32_i32 = arith.constant 32 : i32
    %26 = arith.muli %arg0, %c32_i32 : i32
    %27 = tpu.iota {dimensions = array<i32: 0>} : vector<32x1xi32>
    %28 = vector.broadcast %26 : i32 to vector<32x1xi32>
    %29 = arith.addi %28, %27 : vector<32x1xi32>
    %c80_i32 = arith.constant 80 : i32
    %30 = vector.broadcast %c80_i32 : i32 to vector<32x1xi32>
    %31 = arith.cmpi slt, %29, %30 : vector<32x1xi32>
    %cst_10 = arith.constant 0.000000e+00 : f32
    %32 = vector.broadcast %cst_10 : f32 to vector<32x1xf32>
    %33 = arith.select %31, %24, %32 : vector<32x1xi1>, vector<32x1xf32>
    %cst_11 = arith.constant 0.000000e+00 : f32
    %34 = vector.broadcast %cst_11 : f32 to vector<32x1xf32>
    %35 = arith.select %31, %25, %34 : vector<32x1xi1>, vector<32x1xf32>
    %cst_12 = arith.constant dense<0.000000e+00> : vector<1xf32>
    %36 = vector.multi_reduction <add>, %33, %cst_12 [0] : vector<32x1xf32> to vector<1xf32>
    %37 = vector.shape_cast %36 : vector<1xf32> to vector<1x1xf32>
    %cst_13 = arith.constant dense<0.000000e+00> : vector<1xf32>
    %38 = vector.multi_reduction <add>, %35, %cst_13 [0] : vector<32x1xf32> to vector<1xf32>
    %39 = vector.shape_cast %38 : vector<1xf32> to vector<1x1xf32>
    %40 = vector.shape_cast %37 : vector<1x1xf32> to vector<1x1xf32>
    %41 = vector.broadcast %40 : vector<1x1xf32> to vector<8x128xf32>
    %42 = vector.shape_cast %41 : vector<8x128xf32> to vector<1x8x128xf32>
    %c0_14 = arith.constant 0 : index
    %c0_15 = arith.constant 0 : index
    %c0_16 = arith.constant 0 : index
    %43 = vector.load %arg4[%c0_14, %c0_15, %c0_16] : memref<1x8x128xf32, #tpu.memory_space<vmem>>, vector<1x8x128xf32>
    tpu.vector_store %arg4[%c0_14, %c0_15, %c0_16], %42 {strides = array<i32>} : memref<1x8x128xf32, #tpu.memory_space<vmem>>, vector<1x8x128xf32>,
    %44 = vector.shape_cast %39 : vector<1x1xf32> to vector<1x1xf32>
    %45 = vector.broadcast %44 : vector<1x1xf32> to vector<8x128xf32>
    %46 = vector.shape_cast %45 : vector<8x128xf32> to vector<1x8x128xf32>
    %c0_17 = arith.constant 0 : index
    %c0_18 = arith.constant 0 : index
    %c0_19 = arith.constant 0 : index
    %47 = vector.load %arg5[%c0_17, %c0_18, %c0_19] : memref<1x8x128xf32, #tpu.memory_space<vmem>>, vector<1x8x128xf32>
    tpu.vector_store %arg5[%c0_17, %c0_18, %c0_19], %46 {strides = array<i32>} : memref<1x8x128xf32, #tpu.memory_space<vmem>>, vector<1x8x128xf32>,
    return
  }
  func.func @transform_0(%arg0: i32) -> (i32, i32) {
    %c0_i32 = arith.constant 0 : i32
    %c0_i32_0 = arith.constant 0 : i32
    return %arg0, %c0_i32 : i32, i32
  }
  func.func @transform_1(%arg0: i32) -> (i32, i32) {
    %c0_i32 = arith.constant 0 : i32
    %c0_i32_0 = arith.constant 0 : i32
    return %arg0, %c0_i32 : i32, i32
  }
  func.func @transform_2(%arg0: i32) -> (i32, i32) {
    %c0_i32 = arith.constant 0 : i32
    %c0_i32_0 = arith.constant 0 : i32
    %c0_i32_1 = arith.constant 0 : i32
    return %c0_i32, %c0_i32_0 : i32, i32
  }
  func.func @transform_3(%arg0: i32) -> (i32, i32, i32) {
    %c0_i32 = arith.constant 0 : i32
    %c0_i32_0 = arith.constant 0 : i32
    %c0_i32_1 = arith.constant 0 : i32
    return %arg0, %c0_i32, %c0_i32_0 : i32, i32, i32
  }
  func.func @transform_4(%arg0: i32) -> (i32, i32, i32) {
    %c0_i32 = arith.constant 0 : i32
    %c0_i32_0 = arith.constant 0 : i32
    %c0_i32_1 = arith.constant 0 : i32
    return %arg0, %c0_i32, %c0_i32_0 : i32, i32, i32
  }
}

</mosaic_0001>

<bundles_post_ra>
// kernel: tpu_custom_call.1
= control target key start
LH: loop header
LB: loop body
LE: loop exit
PB: predicated region body
PF: predicated region fallthrough
CT: control target
= control target key end

     0   :  { %10 = vsyncpa [#allocation3], 0  ;;  %s1057_s0 = inlined_call_operand.vmem [shape: f32[80,128], index: 0, kind: input, shape index: {}]   ;;  %s1058_s1 = inlined_call_operand.vmem [shape: s32[80,1], index: 1, kind: input, shape index: {}]   ;;  %s1059_s2 = inlined_call_operand.vmem [shape: s32[1,128], index: 2, kind: input, shape index: {}]   ;;  %s1060_s3 = inlined_call_operand.hbm [shape: f32[3,8,128], index: 3, kind: output, shape index: {0}]   ;;  %s1061_s4 = inlined_call_operand.hbm [shape: f32[3,8,128], index: 4, kind: output, shape index: {1}]  }
   0x1   :  { %12 = vsyncpa [#allocation3 + $0x1], 0 }
   0x2   :  { %13 = vsyncpa [#allocation5], 0 }
   0x3   :  { %15 = vsyncpa [#allocation5 + $0x1], 0  ;;  %s819_s15 = smov 0   ;;  %s821_s16 = smov 0  }
   0x4   :  { %s823_s17 = smov 0   ;;  %s825_s18 = smov 0  }
   0x5 LB: > { %s840_s19 = sadd.s32 4294967295, %s791_s18   ;;  %s607_s20 = sadd.s32 4294967294, %s791_s18   ;;  %s791_s18 = sphi %s825_s18, %s1077_s18   ;;  %s787_s17 = sphi %s823_s17, %s1076_s17   ;;  %s783_s16 = sphi %s821_s16, %s1075_s16   ;;  %s779_s15 = sphi %s819_s15, %s1074_s15  }
   0x6   : > { %s844_s21 = sadd.s32 1, %s791_s18   ;;  %s101_s22 = sadd.s32 1, %s787_s17 }
   0x7   : > { %s98_s23 = ssub.s32 %s791_s18, %s844_s21  ;;  %p111_p0 = scmp.ne.s32.totalorder %s787_s17, %s783_s16 }
   0x8   : > { %p99_p1 = scmp.eq.s32.totalorder %s98_s23, 0  ;;  %p112_p2 = scmp.eq.s32.totalorder %s840_s19, 2 }
   0x9   : > { %p117_p3 = scmp.ne.s32.totalorder %s783_s16, %s779_s15  ;;  %p118_p4 = scmp.eq.s32.totalorder %s607_s20, 2 }
   0xa   : > { %s855_s24 = scalar_select %p99_p1, %s787_s17, %s101_s22  }
   0xb   : > { %p857_p5 = por %p112_p2, %p111_p0  ;;  %p861_p6 = por %p118_p4, %p117_p3 }
   0xc   : > { %p610_p7 = scmp.ge.s32.totalorder %s791_s18, 1  ;;  %p199_p8 = scmp.lt.s32.totalorder %s791_s18, 4 }
   0xe   : > { %p200_p9 = pnand %p610_p7, %p199_p8 }
   0xf   : > { %s613_s27 = sshll.u32 (!%p200_p9), %s840_s19, 2  ;;  %s617_s11 = sshll.u32 (!%p200_p9), %s840_s19, 5 }
  0x10   : > { %203 = sbr.rel (%p200_p9) target bundleno = 350 (0x15e), region = 32  ;;  %p248_p10 = scmp.lt.s32.totalorder (!%p200_p9), %s613_s27, 9 }
  0x11   : > { %s1001_s12 = sand.u32 (!%p200_p9), 1, %s783_s16   ;;  %s620_s14 = sshll.u32 (!%p200_p9), %s840_s19, 3 }
  0x12   : > { %s611_s13 = sshll.u32 (!%p200_p9), %s1001_s12, 3  ;;  %s498_s23 = scalar_lea.hbm (!%p200_p9), %s1061_s4, %s620_s14 }
  0x13   : > { %s484_s29 = scalar_lea.hbm (!%p200_p9), %s1060_s3, %s620_s14  ;;  %s242_s30 = scalar_lea.vmem (!%p200_p9), [#allocation4], %s611_s13 }
  0x14   : > { %s502_s6 = sshll.u32 (!%p200_p9), %s498_s23, 4  ;;  %s235_s7 = scalar_lea.vmem (!%p200_p9), [#allocation2], %s611_s13  ;;  %s503_s6 = int_to_ptr.hbm [resolvable:$true] %s502_s6 }
  0x15   : > { %v793_v0 = vmov 0   ;;  %s1079_s27 = smov (!%p248_p10, %s613_s27), 9  ;;  %v672_v21 = vld [vmem:[%s1059_s2] ss:$0 sm:$0xff]  ;;  %v426_v48 = vlaneseq  ;;  %v915_v54 = vstv %s617_s11  ;;  %s486_s19 = sshll.u32 %s235_s7, 4  ;;  %s1011_s19 = int_to_ptr.vmem [resolvable:$true] %s486_s19 }
  0x16   : > { %670 = vset.pattern.permute.xlu0 %v793_v0  ;;  %669 = vset.pattern.permute.xlu2 %v793_v0  ;;  %s614_s28 = sshll.u32 %s1079_s27, 3  ;;  %s474_s9 = scalar_lea.sflag [#allocation5], %s1001_s12 }
  0x17   : > { %671 = vset.pattern.permute.xlu1 %v793_v0  ;;  %s251_s5 = scalar_lea.vmem %s1057_s0, %s614_s28  ;;  %s265_s8 = scalar_lea.vmem %s1058_s1, %s614_s28  ;;  %v427_v53 = vshrl.u32 %v426_v48, 7 }
  0x18   : > { %v271_v1 = vld [vmem:[%s251_s5] sm:$0xff]  ;;  %v273_v2 = vld [vmem:[%s251_s5 + $0x10] sm:$0xff]  ;;  %v272_v4 = vld [vmem:[%s251_s5 + $0x8] sm:$0xff]  ;;  %s711_s10 = sshra.s32 %s503_s6, 4  ;;  %s717_s20 = scalar_lea.hbm %s1061_s4, 24  ;;  %s712_s10 = int_to_ptr.hbm [resolvable:$true] %s711_s10 }
  0x19   : > { %297 = vmax.xlane.f32.xlu0 %v271_v1  ;;  %301 = vmax.xlane.f32.xlu1 %v273_v2  ;;  %v275_v3 = vld [vmem:[%s265_s8] sm:$0xff]  ;;  %v274_v5 = vld [vmem:[%s251_s5 + $0x18] sm:$0xff]  ;;  %v276_v6 = vld [vmem:[%s265_s8 + $0x8] sm:$0xff]  ;;  %v428_v58 = vadd.s32 8, %v427_v53  ;;  %v922_v59 = vadd.s32 %v915_v54, %v427_v53  ;;  %s500_s5 = sshll.u32 %s242_s30, 4  ;;  %s713_s11 = scalar_lea.hbm %s712_s10, 8  ;;  %s501_s5 = int_to_ptr.vmem [resolvable:$true] %s500_s5 }
  0x1a   : > { %282 = vperm.xlu2 %669, %v275_v3   ;;  %v277_v7 = vld [vmem:[%s265_s8 + $0x10] sm:$0xff]  ;;  %v278_v8 = vld [vmem:[%s265_s8 + $0x18] sm:$0xff]  ;;  %s488_s8 = sshll.u32 %s484_s29, 4  ;;  %p714_p11 = scmp.ne.s32.totalorder %s712_s10, %s713_s11  ;;  %s1013_s8 = int_to_ptr.hbm [resolvable:$true] %s488_s8 }
  0x1b   : > { %vm436_vm11 = vcmp.lt.s32.totalorder %v922_v59, 80  ;;  %p718_p0 = scmp.lt.s32.totalorder %s712_s10, %s1061_s4  ;;  %p719_p1 = scmp.lt.s32.totalorder %s717_s20, %s713_s11 }
  0x1c   : > { %p715_p12 = pnand %p714_p11, %p857_p5 }
  0x1d   : > { %p720_p2 = por %p719_p1, %p718_p0 }
  0x1e   : > { %p716_p13 = pneg %p715_p12 }
  0x20   : > { %p721_p3 = pnand %p720_p2, %p716_p13 }
  0x21   : > { %299 = vmax.xlane.f32.xlu0 %v272_v4  ;;  %303 = vmax.xlane.f32.xlu1 %v274_v5 }
  0x22   : > { %285 = vperm.xlu2 %669, %v276_v6  }
  0x35   : > { %288 = vperm.xlu0 %670, %v277_v7  }
  0x3a   : > { %291 = vperm.xlu1 %671, %v278_v8  }
  0x74   : > { %v283_v19 = vpop.permute.xlu2 %282 }
  0x75   : > { %vm293_vm0 = vcmp.eq.s32.totalorder %v672_v21, %v283_v19 }
  0x76   : > { %v337_v23 = vsel %vm293_vm0, %v271_v1, 0.0 }
  0x7c   : > { %v286_v26 = vpop.permute.xlu2 %285 }
  0x7d   : > { %vm294_vm1 = vcmp.eq.s32.totalorder %v672_v21, %v286_v26 }
  0x7e   : > { %v338_v29 = vsel %vm294_vm1, %v272_v4, 0.0 }
  0x8c   : > { %v874_v9 = vpop.xlane.xlu0 %297  ;;  %v876_v10 = vpop.xlane.xlu1 %301 }
  0x8d   : > { %v305_v11 = vsub.f32 %v271_v1, %v874_v9  ;;  %v307_v12 = vsub.f32 %v273_v2, %v876_v10 }
  0x8f   : > { %v309_v13 = vmul.f32 1.442695, %v305_v11  ;;  %v313_v14 = vmul.f32 1.442695, %v307_v12  ;;  %v433_v11 = vadd.s32 %v915_v54, %v428_v58 }
  0x91   : > { %673 = vpow2.f32 %v309_v13 }
  0x92   : > { %675 = vpow2.f32 %v313_v14  ;;  %v429_v14 = vadd.s32 16, %v427_v53 }
  0x94   : > { %v880_v15 = vpop.xlane.xlu0 %299  ;;  %v886_v22 = vpop.xlane.xlu1 %303 }
  0x95   : > { %v306_v16 = vsub.f32 %v272_v4, %v880_v15  ;;  %v308_v24 = vsub.f32 %v274_v5, %v886_v22 }
  0x97   : > { %v674_v17 = vpop.eup %673  ;;  %v311_v18 = vmul.f32 1.442695, %v306_v16  ;;  %v315_v27 = vmul.f32 1.442695, %v308_v24 }
  0x98   : > { %v676_v20 = vpop.eup %675  ;;  %317 = vadd.xlane.f32.xlu2 %v674_v17  ;;  %v325_v36 = vsel %vm293_vm0, 0.0, %v674_v17 }
  0x99   : > { %677 = vpow2.f32 %v311_v18  ;;  %321 = vadd.xlane.f32.xlu0 %v676_v20 }
  0x9a   : > { %679 = vpow2.f32 %v315_v27 }
  0x9f   : > { %v678_v25 = vpop.eup %677 }
  0xa0   : > { %319 = vadd.xlane.f32.xlu1 %v678_v25  ;;  %341 = vadd.xlane.f32.xlu2 %v337_v23  ;;  %v326_v28 = vsel %vm294_vm1, 0.0, %v678_v25  ;;  %v680_v31 = vpop.eup %679  ;;  %vm437_vm1 = vcmp.lt.s32.totalorder %v433_v11, 80 }
  0xa7   : > { %v289_v30 = vpop.permute.xlu0 %288 }
  0xa8   : > { %331 = vadd.xlane.f32.xlu1 %v326_v28  ;;  %343 = vadd.xlane.f32.xlu2 %v338_v29  ;;  %vm295_vm2 = vcmp.eq.s32.totalorder %v672_v21, %v289_v30  ;;  %v430_v28 = vadd.s32 24, %v427_v53 }
  0xa9   : > { %v327_v33 = vsel %vm295_vm2, 0.0, %v676_v20  ;;  %v339_v34 = vsel %vm295_vm2, %v273_v2, 0.0 }
  0xac   : > { %v292_v32 = vpop.permute.xlu1 %291 }
  0xad   : > { %vm296_vm3 = vcmp.eq.s32.totalorder %v672_v21, %v292_v32 }
  0xae   : > { %v328_v35 = vsel %vm296_vm3, 0.0, %v680_v31  ;;  %v340_v37 = vsel %vm296_vm3, %v274_v5, 0.0 }
  0xaf   : > { %335 = vadd.xlane.f32.xlu0 %v328_v35 }
  0xb0   : > { %333 = vadd.xlane.f32.xlu1 %v327_v33  ;;  %345 = vadd.xlane.f32.xlu2 %v339_v34 }
  0xb8   : > { %323 = vadd.xlane.f32.xlu2 %v680_v31 }
  0xc0   : > { %329 = vadd.xlane.f32.xlu2 %v325_v36 }
  0xc8   : > { %347 = vadd.xlane.f32.xlu2 %v340_v37 }
 0x10b   : > { %v891_v38 = vpop.xlane.xlu2 %317 }
 0x10c   : > { %v322_v41 = vpop.xlane.xlu0 %321  ;;  %v374_v61 = vand.u32 2147483647, %v891_v38  ;;  %v376_v62 = vand.u32 2147483648, %v891_v38  ;;  %vm370_vm10 = vweird.f32 %v891_v38 }
 0x10d   : > { %v404_v60 = vand.u32 2147483647, %v322_v41  ;;  %vm400_vm7 = vweird.f32 %v322_v41  ;;  %v406_v6 = vand.u32 2147483648, %v322_v41 }
 0x10e   : > { %vm953_vm13 = vcmp.eq.f32.partialorder %v374_v61, 8.507059e+37  ;;  %v377_v25 = vor.u32 1.1754944e-38, %v376_v62 }
 0x10f   : > { %vm964_vm15 = vcmp.eq.f32.partialorder %v404_v60, 8.507059e+37  ;;  %v407_v27 = vor.u32 1.1754944e-38, %v406_v6 }
 0x113   : > { %v893_v39 = vpop.xlane.xlu1 %319  ;;  %v895_v40 = vpop.xlane.xlu2 %341 }
 0x114   : > { %681 = vrcp.f32 %v893_v39  ;;  %vm385_vm4 = vweird.f32 %v893_v39  ;;  %v391_v2 = vand.u32 2147483648, %v893_v39  ;;  %v389_v5 = vand.u32 2147483647, %v893_v39 }
 0x115   : > { %683 = vrcp.f32 %v891_v38  ;;  %v357_v26 = vsub.f32 %v895_v40, %v874_v9 }
 0x116   : > { %685 = vrcp.f32 %v322_v41  ;;  %v392_v20 = vor.u32 1.1754944e-38, %v391_v2  ;;  %vm390_vm0 = vcmp.eq.f32.partialorder %v389_v5, 8.507059e+37 }
 0x117   : > { %687 = vlog2.f32 %v891_v38 }
 0x118   : > { %689 = vlog2.f32 %v893_v39 }
 0x119   : > { %691 = vlog2.f32 %v322_v41 }
 0x11a   : > { %v901_v43 = vpop.eup %681 }
 0x11b   : > { %v899_v42 = vpop.xlane.xlu2 %343  ;;  %v903_v44 = vpop.eup %683  ;;  %v381_v45 = vmul.f32 %v901_v43, %v893_v39  ;;  %vm386_vm5 = vweird.f32 %v901_v43 }
 0x11c   : > { %v907_v46 = vpop.eup %685  ;;  %v366_v47 = vmul.f32 %v903_v44, %v891_v38  ;;  %v332_v3 = vpop.xlane.xlu1 %331  ;;  %vm371_vm6 = vweird.f32 %v903_v44  ;;  %vm938_vm9 = vmor %vm385_vm4, %vm386_vm5  ;;  %v358_v33 = vsub.f32 %v899_v42, %v880_v15  ;;  %v434_v15 = vadd.s32 %v915_v54, %v429_v14 }
 0x11d   : > { %v396_v49 = vmul.f32 %v907_v46, %v322_v41  ;;  %v382_v50 = vsub.f32 1.0, %v381_v45  ;;  %vm401_vm8 = vweird.f32 %v907_v46  ;;  %v688_v7 = vpop.eup %687  ;;  %vm949_vm12 = vmor %vm370_vm10, %vm371_vm6  ;;  %v435_v41 = vadd.s32 %v915_v54, %v430_v28 }
 0x11e   : > { %v367_v52 = vsub.f32 1.0, %v366_v47  ;;  %v690_v12 = vpop.eup %689  ;;  %vm960_vm14 = vmor %vm400_vm7, %vm401_vm8  ;;  %v350_v30 = vmul.f32 0.6931472, %v688_v7  ;;  %vm438_vm4 = vcmp.lt.s32.totalorder %v434_v15, 80 }
 0x11f   : > { %v383_v55 = vmul.f32 %v901_v43, %v382_v50  ;;  %v397_v56 = vsub.f32 1.0, %v396_v49  ;;  %v692_v19 = vpop.eup %691  ;;  %v352_v32 = vmul.f32 0.6931472, %v690_v12  ;;  %vm439_vm6 = vcmp.lt.s32.totalorder %v435_v41, 80 }
 0x120   : > { %v368_v57 = vmul.f32 %v903_v44, %v367_v52  ;;  %v354_v37 = vmul.f32 0.6931472, %v692_v19 }
 0x121   : > { %v384_v63 = vadd.f32 %v901_v43, %v383_v55  ;;  %v398_v0 = vmul.f32 %v907_v46, %v397_v56 }
 0x122   : > { %v369_v4 = vadd.f32 %v903_v44, %v368_v57 }
 0x123   : > { %v913_v51 = vpop.xlane.xlu2 %345  ;;  %v388_v13 = vsel %vm938_vm9, %v901_v43, %v384_v63  ;;  %v399_v16 = vadd.f32 %v907_v46, %v398_v0  ;;  %v361_v43 = vsub.f32 %v350_v30, %v357_v26  ;;  %v336_v63 = vpop.xlane.xlu0 %335 }
 0x124   : > { %v373_v24 = vsel %vm949_vm12, %v903_v44, %v369_v4  ;;  %v393_v31 = vsel %vm390_vm0, %v392_v20, %v388_v13  ;;  %v359_v38 = vsub.f32 %v913_v51, %v876_v10  ;;  %v362_v44 = vsub.f32 %v352_v32, %v358_v33  ;;  %v334_v45 = vpop.xlane.xlu1 %333 }
 0x125   : > { %v403_v34 = vsel %vm960_vm14, %v907_v46, %v399_v16  ;;  %v378_v36 = vsel %vm953_vm13, %v377_v25, %v373_v24  ;;  %v394_v40 = vmul.f32 %v393_v31, %v332_v3  ;;  %v440_v60 = vsel %vm436_vm11, %v361_v43, 0.0 }
 0x126   : > { %v408_v46 = vsel %vm964_vm15, %v407_v27, %v403_v34  ;;  %v363_v50 = vsub.f32 %v354_v37, %v359_v38  ;;  %v441_v55 = vsel %vm437_vm1, %v362_v44, 0.0 }
 0x127   : > { %v445_v52 = vsel %vm437_vm1, %v394_v40, 0.0  ;;  %v409_v53 = vmul.f32 %v408_v46, %v334_v45  ;;  %v448_v5 = vadd.f32 %v441_v55, %v440_v60 }
 0x128   : > { %v442_v62 = vsel %vm438_vm4, %v363_v50, 0.0 }
 0x129   : > { %v446_v3 = vsel %vm438_vm4, %v409_v53, 0.0  ;;  %v449_v11 = vadd.f32 %v448_v5, %v442_v62 }
 0x12b   : > { %v930_v1 = vpop.xlane.xlu2 %323 }
 0x12c   : > { %693 = vrcp.f32 %v930_v1  ;;  %v421_v47 = vand.u32 2147483648, %v930_v1  ;;  %v419_v49 = vand.u32 2147483647, %v930_v1  ;;  %vm415_vm3 = vweird.f32 %v930_v1 }
 0x12d   : > { %695 = vlog2.f32 %v930_v1 }
 0x12e   : > { %v422_v56 = vor.u32 1.1754944e-38, %v421_v47  ;;  %vm420_vm7 = vcmp.eq.f32.partialorder %v419_v49, 8.507059e+37 }
 0x132   : > { %v694_v29 = vpop.eup %693 }
 0x133   : > { %v411_v35 = vmul.f32 %v694_v29, %v930_v1  ;;  %v330_v9 = vpop.xlane.xlu2 %329  ;;  %vm416_vm2 = vweird.f32 %v694_v29  ;;  %v696_v51 = vpop.eup %695 }
 0x134   : > { %v379_v39 = vmul.f32 %v378_v36, %v330_v9  ;;  %vm417_vm5 = vmor %vm415_vm3, %vm416_vm2  ;;  %v356_v2 = vmul.f32 0.6931472, %v696_v51 }
 0x135   : > { %v412_v42 = vsub.f32 1.0, %v411_v35 }
 0x136   : > { %v444_v10 = vsel %vm436_vm11, %v379_v39, 0.0 }
 0x137   : > { %v413_v48 = vmul.f32 %v694_v29, %v412_v42  ;;  %v457_v57 = vadd.f32 %v445_v52, %v444_v10 }
 0x139   : > { %v414_v54 = vadd.f32 %v694_v29, %v413_v48  ;;  %v458_v6 = vadd.f32 %v457_v57, %v446_v3 }
 0x13b   : > { %v418_v58 = vsel %vm417_vm5, %v694_v29, %v414_v54  ;;  %v348_v61 = vpop.xlane.xlu2 %347 }
 0x13c   : > { %v423_v0 = vsel %vm420_vm7, %v422_v56, %v418_v58  ;;  %v360_v1 = vsub.f32 %v348_v61, %v886_v22 }
 0x13d   : > { %v424_v4 = vmul.f32 %v423_v0, %v336_v63 }
 0x13e   : > { %v364_v7 = vsub.f32 %v356_v2, %v360_v1 }
 0x13f   : > { %v447_v8 = vsel %vm439_vm6, %v424_v4, 0.0 }
 0x140   : > { %v459_v12 = vadd.f32 %v458_v6, %v447_v8  ;;  %v443_v59 = vsel %vm439_vm6, %v364_v7, 0.0 }
 0x141   : > { %v450_v13 = vadd.f32 %v449_v11, %v443_v59 }
 0x142   : > { %v460_v14 = vrot.slane %v459_v12, 4 }
 0x143   : > { %v451_v16 = vrot.slane %v450_v13, 4 }
 0x144   : > { %v461_v22 = vadd.f32 %v460_v14, %v459_v12 }
 0x145   : > { %v452_v17 = vadd.f32 %v451_v16, %v450_v13 }
 0x146   : > { %v462_v18 = vrot.slane %v461_v22, 2 }
 0x147   : > { %v453_v19 = vrot.slane %v452_v17, 2 }
 0x148   : > { %v463_v20 = vadd.f32 %v462_v18, %v461_v22 }
 0x149   : > { %v454_v21 = vadd.f32 %v453_v19, %v452_v17 }
 0x14a   : > { %v464_v23 = vrot.slane %v463_v20, 1 }
 0x14b   : > { %v455_v24 = vrot.slane %v454_v21, 1 }
 0x14c   : > { %v465_v25 = vadd.f32 %v464_v23, %v463_v20 }
 0x14d   : > { %v456_v26 = vadd.f32 %v455_v24, %v454_v21 }
 0x14e   : > { %467 = vst [vmem:[%s242_s30] sm:$0xff] %v465_v25 }
 0x14f   : > { %466 = vst [vmem:[%s235_s7] sm:$0xff] %v456_v26 }
 0x150   : > { %724 = shalt.err (!%p721_p3)
}
 0x151   : > { %625 = dma.vmem_to_hbm [thread:$0]  (%p857_p5), %s501_s5, 128, %s503_s6, %s474_s9  }
 0x152   : > { %s469_s27 = scalar_lea.sflag [#allocation3], %s1001_s12  ;;  %s739_s28 = sshra.s32 %s1013_s8, 4  ;;  %s740_s28 = int_to_ptr.hbm [resolvable:$true] %s739_s28 }
 0x153   : > { %s741_s29 = scalar_lea.hbm %s740_s28, 8  ;;  %s745_s10 = scalar_lea.hbm %s1060_s3, 24 }
 0x154   : > { %p742_p4 = scmp.ne.s32.totalorder %s740_s28, %s741_s29  ;;  %p746_p9 = scmp.lt.s32.totalorder %s740_s28, %s1060_s3 }
 0x155   : > { %p747_p10 = scmp.lt.s32.totalorder %s745_s10, %s741_s29 }
 0x156   : > { %p743_p7 = pnand %p742_p4, %p857_p5 }
 0x157   : > { %p748_p11 = por %p747_p10, %p746_p9 }
 0x158   : > { %p744_p8 = pneg %p743_p7 }
 0x15a   : > { %p749_p12 = pnand %p748_p11, %p744_p8 }
 0x15c   : > { %752 = shalt.err (!%p749_p12)
}
 0x15d   : > { %624 = dma.vmem_to_hbm [thread:$0]  (%p857_p5), %s1011_s19, 128, %s1013_s8, %s469_s27  }
 0x15e PF: > { %p635_p13 = scmp.ge.s32.totalorder %s791_s18, 2  ;;  %s514_s12 = sand.u32 1, %s779_s15  }
 0x15f   : > { %s515_s5 = scalar_lea.sflag [#allocation3], %s514_s12 }
 0x160   : > { %p629_p0 = pnand %p635_p13, %p861_p6 }
 0x162   : > { %p630_p1 = pneg %p629_p0 }
 0x164   : > { %770 = dma.done.wait (%p630_p1), %s515_s5, 128  }
 0x165   : > { %772 = vsyncadd (%p630_p1), %s515_s5, 4294967168  ;;  %s525_s6 = scalar_lea.sflag [#allocation5], %s514_s12 }
 0x166   : > { %774 = dma.done.wait (%p630_p1), %s525_s6, 128  }
 0x167   : > { %776 = vsyncadd (%p630_p1), %s525_s6, 4294967168  ;;  %p18_p5 = scmp.ge.s32.totalorder %s844_s21, 5   ;;  %s1074_s15 = smov %s783_s16 }
 0x168   : > { %s1075_s16 = smov %s787_s17  ;;  %s1076_s17 = smov %s855_s24 }
 0x169   : > { %s1077_s18 = smov %s844_s21  ;;  %20 = sbr.rel (!%p18_p5) target bundleno = 5 (0x5), region = 87 }
 0x16e   :  { %531 = vsyncpa [#allocation3], 1 }
 0x16f   :  { %533 = vsyncpa [#allocation3 + $0x1], 1 }
 0x170   :  { %534 = vsyncpa [#allocation5], 1 }
 0x171   :  { %536 = vsyncpa [#allocation5 + $0x1], 1 }

</bundles_post_ra>
